<compile_context>
chip_gen: v5e
topology: v5e:2x2
jax: 0.10.0
libtpu: 0.0.40
codegen_flags: <defaults>
</compile_context>

<pallas_src>
import functools

import jax
import jax.numpy as jnp
from jax.experimental import pallas as pl
from jax.experimental.pallas import tpu as pltpu


def _round_up(x, m):
    return ((x + m - 1) // m) * m


def _cdiv(a, b):
    return (a + b - 1) // b


def _vmem_capacity_bytes():
    """Per-TensorCore VMEM capacity; conservative fallback if unavailable."""
    try:
        info = pltpu.get_tpu_info()
        cap = getattr(info, "vmem_capacity_bytes", None)
        if cap:
            return int(cap)
    except Exception:
        pass
    return 64 * 1024 * 1024  # v7x per-TC size: safe lower bound everywhere.


def _maybe_cast(x, compute_dtype):
    if compute_dtype is not None and x.dtype != jnp.dtype(compute_dtype):
        return x.astype(compute_dtype)
    return x


def _linear_kernel_fused(x_ref, w_ref, b_ref, o_ref, *, compute_dtype):
    # n_k == 1 fast path: no accumulator scratch, no pl.when phases.
    # x_ref: (1, Cin, t_hw), w_ref: (t_co, Cin), b_ref: (t_co, 1),
    # o_ref: (1, t_co, t_hw)
    x = _maybe_cast(x_ref[0], compute_dtype)
    w = _maybe_cast(w_ref[...], compute_dtype)
    acc = jnp.dot(w, x, preferred_element_type=jnp.float32)
    o_ref[0] = (acc + b_ref[...].astype(jnp.float32)).astype(o_ref.dtype)


def _linear_kernel_ksplit(x_ref, w_ref, b_ref, o_ref, acc_ref, *,
                          compute_dtype):
    # K-tiled path: f32 accumulator in VMEM scratch; bias folded into epilogue.
    k = pl.program_id(3)

    @pl.when(k == 0)
    def _():
        acc_ref[...] = jnp.zeros_like(acc_ref)

    x = _maybe_cast(x_ref[0], compute_dtype)
    w = _maybe_cast(w_ref[...], compute_dtype)
    acc_ref[...] += jnp.dot(w, x, preferred_element_type=jnp.float32)

    @pl.when(k == pl.num_programs(3) - 1)
    def _():
        o_ref[0] = (acc_ref[...]
                    + b_ref[...].astype(jnp.float32)).astype(o_ref.dtype)


def _fit_tiles(Cin, Cout, HW, x_bytes, w_bytes, o_bytes, budget,
               t_hw_target, t_co_target, t_k_target, co_align):
    """Pick (t_hw, t_co, t_k) respecting (8,128) alignment and the VMEM budget
    (double-buffered inputs/outputs + f32 accumulator when K is tiled)."""
    # Clamp user-supplied targets to legal alignments.
    t_hw_target = max(128, (t_hw_target // 128) * 128)
    t_co_target = max(co_align, (t_co_target // co_align) * co_align)
    t_k_target = max(128, (t_k_target // 128) * 128)

    # Initial picks: full-extent (no tiling, no padding) whenever small.
    t_hw = HW if HW <= t_hw_target else t_hw_target
    t_co = Cout if Cout <= 2 * t_co_target else t_co_target
    k_untiled_cap = max(4 * t_k_target, 4096)   # keep n_k == 1 in ~all real cases
    t_k = Cin if Cin <= k_untiled_cap else t_k_target

    def footprint(thw, tco, tk):
        split_k = tk < Cin
        xb = tk * thw * x_bytes
        wb = tco * tk * w_bytes
        ob = tco * thw * o_bytes
        bb = _round_up(tco, 8) * 128 * 4
        acc = tco * thw * 4 if split_k else 0
        return 2 * (xb + wb + ob + bb) + acc

    # Greedy shrink until the (double-buffered) working set fits.
    for _ in range(64):
        if footprint(t_hw, t_co, t_k) <= budget:
            break
        if t_hw > 512:
            t_hw = max(512, ((t_hw // 2) // 128) * 128)
        elif t_co > max(128, 2 * co_align):
            t_co = max(co_align, ((t_co // 2) // co_align) * co_align)
        elif t_k > 256:
            t_k = max(128, ((t_k // 2) // 128) * 128)
        elif t_hw > 128:
            t_hw = max(128, ((t_hw // 2) // 128) * 128)
        elif t_co > co_align:
            t_co = max(co_align, ((t_co // 2) // co_align) * co_align)
        else:
            break

    # Never exceed the full extent (full-extent blocks are always legal).
    t_hw = HW if t_hw >= HW else t_hw
    t_co = Cout if t_co >= Cout else t_co
    t_k = Cin if t_k >= Cin else t_k
    return t_hw, t_co, t_k


def linear_1x1_conv(x_nchw, weight, bias, *,
                    t_hw_target=2048, t_co_target=256, t_k_target=512,
                    compute_dtype=None):
    """Equivalent of torch.nn.Conv2d(c_in, c_out, kernel_size=1, bias=True).

    x_nchw: (N, Cin, H, W); weight: (Cout, Cin, 1, 1); bias: (Cout,)
    returns (N, Cout, H, W)

    compute_dtype: optional MXU input dtype (e.g. jnp.bfloat16). The cast is
    done inside the kernel (no extra HBM pass); accumulation stays in f32.
    """
    N, Cin, H, W = x_nchw.shape
    Cout = weight.shape[0]
    HW = H * W
    out_dtype = x_nchw.dtype

    # --- generation-aware VMEM budget ---------------------------------------
    vmem_cap = _vmem_capacity_bytes()            # 64 MiB (v7x) / 128 MiB (v5e/v6e)
    vmem_limit = min(int(vmem_cap * 0.75), 100 * 1024 * 1024)
    tile_budget = int(vmem_limit * 0.9)

    # --- tile sizing ----------------------------------------------------------
    co_align = 16 if jnp.dtype(out_dtype).itemsize <= 2 else 8
    t_hw, t_co, t_k = _fit_tiles(
        Cin, Cout, HW,
        jnp.dtype(x_nchw.dtype).itemsize,
        jnp.dtype(weight.dtype).itemsize,
        jnp.dtype(out_dtype).itemsize,
        tile_budget, t_hw_target, t_co_target, t_k_target, co_align)

    split_k = t_k < Cin
    n_hw = _cdiv(HW, t_hw)
    n_co = _cdiv(Cout, t_co)

    # --- layout plumbing (zero-copy views; pad only the tiled K dim) ---------
    x3 = x_nchw.reshape(N, Cin, HW)
    w2 = weight.reshape(Cout, Cin)
    b2 = bias.reshape(Cout, 1)

    if split_k:
        ci_p = _round_up(Cin, t_k)
        if ci_p != Cin:
            # Correctness: padded K entries feeding the dot must be zero.
            x3 = jnp.pad(x3, ((0, 0), (0, ci_p - Cin), (0, 0)))
            w2 = jnp.pad(w2, ((0, 0), (0, ci_p - Cin)))
        n_k = ci_p // t_k
    else:
        n_k = 1

    compiler_params = pltpu.CompilerParams(
        dimension_semantics=("parallel", "parallel", "parallel")
        + (("arbitrary",) if split_k else ()),
        vmem_limit_bytes=vmem_limit,
    )
    out_shape = jax.ShapeDtypeStruct((N, Cout, HW), out_dtype)

    if not split_k:
        out3 = pl.pallas_call(
            functools.partial(_linear_kernel_fused, compute_dtype=compute_dtype),
            out_shape=out_shape,
            grid_spec=pltpu.PrefetchScalarGridSpec(
                num_scalar_prefetch=0,
                grid=(N, n_co, n_hw),
                in_specs=[
                    pl.BlockSpec((1, t_k, t_hw), lambda n, co, hw: (n, 0, hw)),
                    pl.BlockSpec((t_co, t_k),    lambda n, co, hw: (co, 0)),
                    pl.BlockSpec((t_co, 1),      lambda n, co, hw: (co, 0)),
                ],
                out_specs=pl.BlockSpec((1, t_co, t_hw),
                                       lambda n, co, hw: (n, co, hw)),
            ),
            compiler_params=compiler_params,
        )(x3, w2, b2)
    else:
        out3 = pl.pallas_call(
            functools.partial(_linear_kernel_ksplit, compute_dtype=compute_dtype),
            out_shape=out_shape,
            grid_spec=pltpu.PrefetchScalarGridSpec(
                num_scalar_prefetch=0,
                grid=(N, n_co, n_hw, n_k),           # reduction (K) axis last
                in_specs=[
                    pl.BlockSpec((1, t_k, t_hw), lambda n, co, hw, k: (n, k, hw)),
                    pl.BlockSpec((t_co, t_k),    lambda n, co, hw, k: (co, k)),
                    pl.BlockSpec((t_co, 1),      lambda n, co, hw, k: (co, 0)),
                ],
                out_specs=pl.BlockSpec((1, t_co, t_hw),
                                       lambda n, co, hw, k: (n, co, hw)),
                scratch_shapes=[pltpu.VMEM((t_co, t_hw), jnp.float32)],
            ),
            compiler_params=compiler_params,
        )(x3, w2, b2)

    return out3.reshape(N, Cout, H, W)


if __name__ == "__main__":
    # Small, deterministic example consistent with the module's forward:
    # x: (batch=2, c_in=4, H=16, W=16), c_out=8
    key = jax.random.PRNGKey(0)
    k_x, k_w, k_b = jax.random.split(key, 3)

    N, Cin, H, W, Cout = 2, 4, 16, 16, 8
    x = jax.random.normal(k_x, (N, Cin, H, W), dtype=jnp.float32)

    # Deterministic parameter init (mimics Conv2d's uniform fan-in init scale).
    fan_in = Cin * 1 * 1
    bound = 1.0 / (fan_in ** 0.5)
    weight = jax.random.uniform(k_w, (Cout, Cin, 1, 1), dtype=jnp.float32,
                                minval=-bound, maxval=bound)
    bias = jax.random.uniform(k_b, (Cout,), dtype=jnp.float32,
                              minval=-bound, maxval=bound)

    # Plain-JAX reference (einsum over channels).
    ref = (jnp.einsum("nchw,oc->nohw", x, weight[:, :, 0, 0])
           + bias[None, :, None, None])

    # Exact f32 path (matches the PyTorch module's semantics).
    out = jax.block_until_ready(linear_1x1_conv(x, weight, bias))
    assert out.shape == (N, Cout, H, W)
    assert jnp.allclose(out, ref, atol=1e-5, rtol=1e-5)

    # bf16 MXU path: cast happens in-kernel, accumulation stays f32.
    out_bf16 = jax.block_until_ready(
        linear_1x1_conv(x, weight, bias, compute_dtype=jnp.bfloat16))
    assert out_bf16.shape == (N, Cout, H, W)
    assert jnp.allclose(out_bf16, ref, atol=3e-2, rtol=3e-2)

    print("KERNEL_OK")
</pallas_src>

<mosaic_0001>
module attributes {stable_mosaic.version = 11 : i64} {
  func.func @_linear_kernel_fused(%arg0: i32, %arg1: i32, %arg2: i32, %arg3: memref<1x4x256xf32, #tpu.memory_space<vmem>>, %arg4: memref<8x4xf32, #tpu.memory_space<vmem>>, %arg5: memref<8x1xf32, #tpu.memory_space<vmem>>, %arg6: memref<1x8x256xf32, #tpu.memory_space<vmem>>) attributes {dimension_semantics = [#tpu.dimension_semantics<parallel>, #tpu.dimension_semantics<parallel>, #tpu.dimension_semantics<parallel>], iteration_bounds = array<i64: 2, 1, 1>, scalar_prefetch = 0 : i64, scratch_operands = 0 : i64, tpu.core_type = #tpu.core_type<tc>, window_params = [{transform_indices = @transform_0, window_bounds = array<i64: 1, 4, 256>}, {transform_indices = @transform_1, window_bounds = array<i64: 8, 4>}, {transform_indices = @transform_2, window_bounds = array<i64: 8, 1>}, {transform_indices = @transform_3, window_bounds = array<i64: 1, 8, 256>}]} {
    %c0 = arith.constant 0 : index
    %c0_0 = arith.constant 0 : index
    %c0_1 = arith.constant 0 : index
    %0 = vector.load %arg3[%c0, %c0_0, %c0_1] : memref<1x4x256xf32, #tpu.memory_space<vmem>>, vector<1x4x256xf32>
    %1 = vector.shape_cast %0 : vector<1x4x256xf32> to vector<4x256xf32>
    %c0_2 = arith.constant 0 : index
    %c0_3 = arith.constant 0 : index
    %2 = vector.load %arg4[%c0_2, %c0_3] : memref<8x4xf32, #tpu.memory_space<vmem>>, vector<8x4xf32>
    %cst = arith.constant dense<0.000000e+00> : vector<8x256xf32>
    %3 = tpu.matmul %2, %1, %cst {dimension_numbers = #tpu.dot_dimension_numbers<[1], [0], [0], [1], [0, 0, 1, 1], [], []>} : vector<8x4xf32>, vector<4x256xf32>, vector<8x256xf32> -> vector<8x256xf32>
    %c0_4 = arith.constant 0 : index
    %c0_5 = arith.constant 0 : index
    %4 = vector.load %arg5[%c0_4, %c0_5] : memref<8x1xf32, #tpu.memory_space<vmem>>, vector<8x1xf32>
    %5 = vector.broadcast %4 : vector<8x1xf32> to vector<8x256xf32>
    %6 = arith.addf %3, %5 : vector<8x256xf32>
    %c0_6 = arith.constant 0 : index
    %c0_7 = arith.constant 0 : index
    %c0_8 = arith.constant 0 : index
    %7 = vector.load %arg6[%c0_6, %c0_7, %c0_8] : memref<1x8x256xf32, #tpu.memory_space<vmem>>, vector<1x8x256xf32>
    %8 = vector.shape_cast %7 : vector<1x8x256xf32> to vector<8x256xf32>
    %9 = vector.shape_cast %6 : vector<8x256xf32> to vector<1x8x256xf32>
    tpu.vector_store %arg6[%c0_6, %c0_7, %c0_8], %9 {strides = array<i32>} : memref<1x8x256xf32, #tpu.memory_space<vmem>>, vector<1x8x256xf32>,
    return
  }
  func.func @transform_0(%arg0: i32, %arg1: i32, %arg2: i32) -> (i32, i32, i32) {
    %c0_i32 = arith.constant 0 : i32
    %c0_i32_0 = arith.constant 0 : i32
    return %arg0, %c0_i32, %arg2 : i32, i32, i32
  }
  func.func @transform_1(%arg0: i32, %arg1: i32, %arg2: i32) -> (i32, i32) {
    %c0_i32 = arith.constant 0 : i32
    %c0_i32_0 = arith.constant 0 : i32
    return %arg1, %c0_i32 : i32, i32
  }
  func.func @transform_2(%arg0: i32, %arg1: i32, %arg2: i32) -> (i32, i32) {
    %c0_i32 = arith.constant 0 : i32
    %c0_i32_0 = arith.constant 0 : i32
    return %arg1, %c0_i32 : i32, i32
  }
  func.func @transform_3(%arg0: i32, %arg1: i32, %arg2: i32) -> (i32, i32, i32) {
    %c0_i32 = arith.constant 0 : i32
    return %arg0, %arg1, %arg2 : i32, i32, i32
  }
}

</mosaic_0001>

<bundles_post_ra>
// kernel: tpu_custom_call.1
= control target key start
LH: loop header
LB: loop body
LE: loop exit
PB: predicated region body
PF: predicated region fallthrough
CT: control target
= control target key end

     0   :  { %8 = vsyncpa [#allocation3], 0  ;;  %s720_s0 = inlined_call_operand.vmem [shape: f32[2,4,256], index: 0, kind: input, shape index: {}]   ;;  %s721_s1 = inlined_call_operand.vmem [shape: f32[8,4], index: 1, kind: input, shape index: {}]   ;;  %s722_s2 = inlined_call_operand.vmem [shape: f32[8,1], index: 2, kind: input, shape index: {}]   ;;  %s723_s3 = inlined_call_operand.hbm [shape: f32[2,8,256], index: 3, kind: output, shape index: {}]  }
   0x1   :  { %10 = vsyncpa [#allocation3 + $0x1], 0  ;;  %s617_s12 = smov 0   ;;  %s619_s13 = smov 0  }
   0x2   :  { %s621_s14 = smov 0   ;;  %s623_s15 = smov 0  }
   0x3   :  { %s625_s16 = smov 0   ;;  %s627_s17 = smov 0  }
   0x4 LB: > { %s438_s18 = sadd.s32 4294967295, %s594_s17   ;;  %s439_s19 = sadd.s32 4294967294, %s594_s17   ;;  %s594_s17 = sphi %s627_s17, %s16_s17   ;;  %s590_s16 = sphi %s625_s16, %s730_s16   ;;  %s586_s15 = sphi %s623_s15, %s729_s15   ;;  %s582_s14 = sphi %s621_s14, %s728_s14   ;;  %s578_s13 = sphi %s619_s13, %s727_s13   ;;  %s574_s12 = sphi %s617_s12, %s726_s12  }
   0x5   : > { %s35_s20 = sadd.s32 1, %s590_s16  ;;  %s126_s21 = sadd.s32 1, %s582_s14 }
   0x6   : > { %p37_p0 = scmp.ge.s32.totalorder %s35_s20, 2  ;;  %p136_p1 = scmp.ne.s32.totalorder %s582_s14, %s578_s13 }
   0x7   : > { %p137_p2 = scmp.eq.s32.totalorder %s438_s18, 1  ;;  %p142_p3 = scmp.ne.s32.totalorder %s578_s13, %s574_s12 }
   0x8   : > { %s732_s20 = smov (%p37_p0, %s35_s20), 0  ;;  %p143_p5 = scmp.eq.s32.totalorder %s439_s19, 1 }
   0x9   : > { %p657_p4 = por %p137_p2, %p136_p1  ;;  %s119_s23 = ssub.s32 %s590_s16, %s732_s20 }
   0xa   : > { %p444_p6 = scmp.ge.s32.totalorder %s594_s17, 1  ;;  %p124_p7 = scmp.eq.s32.totalorder %s119_s23, 0 }
   0xb   : > { %p664_p8 = por %p143_p5, %p142_p3  ;;  %p188_p9 = scmp.lt.s32.totalorder %s594_s17, 3 }
   0xc   : > { %s670_s25 = scalar_select %p124_p7, %s582_s14, %s126_s21  }
   0xd   : > { %p189_p10 = pnand %p444_p6, %p188_p9 }
   0xe   : > { %p225_p11 = scmp.lt.s32.totalorder (!%p189_p10), %s586_s15, 1  ;;  %s221_s8 = sand.u32 (!%p189_p10), 1, %s578_s13  }
   0xf   : > { %192 = sbr.rel (%p189_p10) target bundleno = 166 (0xa6), region = 32  ;;  %s445_s9 = sshll.u32 (!%p189_p10), %s221_s8, 4 }
  0x10   : > { %s458_s10 = sshll.u32 (!%p189_p10), %s586_s15, 4  ;;  %s223_s21 = scalar_lea.vmem (!%p189_p10), [#allocation2], %s445_s9 }
  0x11   : > { %s322_s19 = scalar_lea.hbm (!%p189_p10), %s723_s3, %s458_s10  ;;  %s324_s23 = sshll.u32 (!%p189_p10), %s223_s21, 4  ;;  %s325_s23 = int_to_ptr.vmem [resolvable:$true] %s324_s23 }
  0x12   : > { %s326_s26 = sshll.u32 (!%p189_p10), %s322_s19, 4  ;;  %s307_s27 = scalar_lea.sflag (!%p189_p10), [#allocation3], %s221_s8  ;;  %s327_s26 = int_to_ptr.hbm [resolvable:$true] %s326_s26 }
  0x13   : > { %s536_s4 = scalar_lea.hbm (!%p189_p10), %s723_s3, 32 }
  0x14   : > { %v245_v0 = vld [vmem:[%s722_s2] sm:$0xff]  ;;  %v596_v1 = vmov 0   ;;  %s226_s28 = scalar_select %p225_p11, %s586_s15, 1  ;;  %vm259_vm0 = vcmask 1043456   ;;  %vm255_vm1 = vcmask 31744  }
  0x15   : > { %515 = vset.pattern.permute.xlu0 %v596_v1  ;;  %v244_v3 = vld [vmem:[%s721_s1] sm:$0xff] }
  0x16   : > { %248 = vperm.xlu0 %515, %v245_v0   ;;  %s457_s29 = sshll.u32 %s226_s28, 3  ;;  %s530_s28 = sshra.s32 %s327_s26, 4  ;;  %s531_s28 = int_to_ptr.hbm [resolvable:$true] %s530_s28 }
  0x17   : > { %s232_s5 = scalar_lea.vmem %s720_s0, %s457_s29  ;;  %s532_s15 = scalar_lea.hbm %s531_s28, 16 }
  0x18   : > { %v243_v2 = vld [vmem:[%s232_s5] sm:$0xff]  ;;  %p533_p12 = scmp.ne.s32.totalorder %s531_s28, %s532_s15  ;;  %p537_p1 = scmp.lt.s32.totalorder %s531_s28, %s723_s3 }
  0x19   : > { %252 = vst [vmem:[#allocation1] ss:$2 sm:$0xff] %v243_v2  ;;  %p538_p2 = scmp.lt.s32.totalorder %s536_s4, %s532_s15 }
  0x1a   : > { %p534_p13 = pnand %p533_p12, %p657_p4 }
  0x1b   : > { %p539_p3 = por %p538_p2, %p537_p1 }
  0x1c   : > { %p535_p0 = pneg %p534_p13 }
  0x1e   : > { %p540_p5 = pnand %p539_p3, %p535_p0 }
  0x20   : > { %v253_v4 = vld.sshfl [vmem:[#allocation1] sm:$0xff pattern:$0x75316420]  ;;  %v254_v5 = vld.sshfl [vmem:[#allocation1 + $0x8] sm:$0xff pattern:$0x75316420] }
  0x21   : > { %448 = vmatpush.msk.msra.mxu0 %vm259_vm0, %v253_v4  ;;  %450 = vmatpush.msk.msra.mxu1 %vm259_vm0, %v254_v5 }
  0x22   : > { %449 = vmatmul.msk.f32.vlgmr.msra.gmra.mxu0 %vm255_vm1, %v244_v3  ;;  %451 = vmatmul.msk.f32.vlgmr.msra.gmra.mxu1 %vm255_vm1, %v244_v3 }
  0x88   : > { %v249_v6 = vpop.permute.xlu0 %248 }
  0x9f   : > { %v281_v7 = vpop.f32.mrf.mxu0  ;;  %v301_v8 = vpop.f32.mrf.mxu1 }
  0xa0   : > { %v282_v9 = vadd.f32 %v281_v7, %v249_v6  ;;  %v302_v10 = vadd.f32 %v301_v8, %v249_v6 }
  0xa2   : > { %304 = vst [vmem:[%s223_s21] sm:$0xff] %v282_v9 }
  0xa3   : > { %305 = vst [vmem:[%s223_s21 + $0x8] sm:$0xff] %v302_v10 }
  0xa4   : > { %543 = shalt.err (!%p540_p5)
}
  0xa5   : > { %459 = dma.vmem_to_hbm [thread:$0]  (%p657_p4), %s325_s23, 256, %s327_s26, %s307_s27  }
  0xa6 PF: > { %p465_p6 = scmp.ge.s32.totalorder %s594_s17, 2  ;;  %s338_s7 = sand.u32 1, %s574_s12  }
  0xa7   : > { %s339_s8 = scalar_lea.sflag [#allocation3], %s338_s7 }
  0xa8   : > { %p462_p7 = pnand %p465_p6, %p664_p8 }
  0xaa   : > { %p463_p9 = pneg %p462_p7 }
  0xac   : > { %569 = dma.done.wait (%p463_p9), %s339_s8, 256  }
  0xad   : > { %571 = vsyncadd (%p463_p9), %s339_s8, 4294967040  ;;  %s16_s17 = sadd.s32 1, %s594_s17   ;;  %s726_s12 = smov %s578_s13 }
  0xae   : > { %p13_p10 = scmp.ge.s32.totalorder %s16_s17, 4   ;;  %s727_s13 = smov %s582_s14 }
  0xaf   : > { %s728_s14 = smov %s670_s25  ;;  %s729_s15 = smov %s590_s16 }
  0xb0   : > { %s730_s16 = smov %s732_s20  ;;  %15 = sbr.rel (!%p13_p10) target bundleno = 4 (0x4), region = 73 }
  0xb5   :  { %345 = vsyncpa [#allocation3], 1 }
  0xb6   :  { %347 = vsyncpa [#allocation3 + $0x1], 1 }

</bundles_post_ra>
